<compile_context>
chip_gen: v5e
topology: v5e:2x2
jax: 0.10.0
libtpu: 0.0.40
codegen_flags: <defaults>
</compile_context>

<pallas_src>
import functools

import jax
import jax.numpy as jnp
from jax.experimental import pallas as pl
from jax.experimental.pallas import tpu as pltpu

_VMEM_LIMIT = 48 * 1024 * 1024   # <= v7x 64 MiB VMEM; raises v5e's 16 MiB default
_ADJ_PACK = 32                   # int8 sublane packing for the adjacency tiles


def _round_up(x, m):
    return ((x + m - 1) // m) * m


def _block_diag_att(att, heads, channels):
    """att [H, C] -> block-diagonal [H*C, H] so h @ blk yields all heads' logits."""
    blk = jnp.zeros((heads * channels, heads), jnp.float32)
    for h in range(heads):
        blk = blk.at[h * channels:(h + 1) * channels, h].set(att[h])
    return blk


# ----------------------------- stage 1: projection -----------------------------
# One wide MXU matmul per src tile: y = x @ [W_pad | W@att_src_blk | W@att_dst_blk]
#   h (lane-dense bf16)   = y[:, :hc_pad]
#   per-head logits (f32) = y[:, hc_pad : hc_pad + 2*heads]

def _gat_proj_kernel(hc_pad, two_h, x_ref, wext_ref, h_ref, a_ref):
    y = jnp.dot(x_ref[...], wext_ref[...], preferred_element_type=jnp.float32)
    h_ref[...] = y[:, :hc_pad].astype(h_ref.dtype)        # full-lane bf16 store
    a_ref[...] = y[:, hc_pad:hc_pad + two_h]              # tiny f32 logit store


def _gat_project(x, w_ext, hc_pad, heads, tile_rows):
    n, fin = x.shape
    wext_cols = w_ext.shape[1]
    n_pad = _round_up(n, tile_rows)
    x_p = jnp.pad(x, ((0, n_pad - n), (0, 0)))
    kernel = functools.partial(_gat_proj_kernel, hc_pad, 2 * heads)
    return pl.pallas_call(
        kernel,
        out_shape=(jax.ShapeDtypeStruct((n_pad, hc_pad), jnp.bfloat16),
                   jax.ShapeDtypeStruct((n_pad, 2 * heads), jnp.float32)),
        grid_spec=pltpu.PrefetchScalarGridSpec(
            num_scalar_prefetch=0,
            grid=(n_pad // tile_rows,),
            in_specs=[pl.BlockSpec((tile_rows, fin), lambda i: (i, 0)),
                      pl.BlockSpec((fin, wext_cols), lambda i: (0, 0))],
            out_specs=[pl.BlockSpec((tile_rows, hc_pad), lambda i: (i, 0)),
                       pl.BlockSpec((tile_rows, 2 * heads), lambda i: (i, 0))]),
        compiler_params=pltpu.CompilerParams(
            dimension_semantics=("parallel",),
            vmem_limit_bytes=_VMEM_LIMIT),
    )(x_p, w_ext)


# -------------------- stage 2: tiled attention (online softmax) -----------------

def _gat_attn_kernel(heads, channels,
                     cnt_ref,                            # SMEM scalar prefetch
                     a_dst_ref, a_srcT_ref, h_ref, adj_ref, bias_ref, expand_ref,
                     out_ref, m_ref, l_ref, acc_ref):
    d = pl.program_id(0)
    s = pl.program_id(1)

    @pl.when(s == 0)
    def _():
        # Floor of -1e20 (NOT -1e30): masked logits carry an additive -1e30
        # bias, so exp(e - m) underflows to exactly 0 without a '* adj' pass.
        m_ref[...] = jnp.full_like(m_ref, -1e20)
        l_ref[...] = jnp.zeros_like(l_ref)
        acc_ref[...] = jnp.zeros_like(acc_ref)

    @pl.when(cnt_ref[d, s] > 0)          # block-sparse skip of empty tiles
    def _():
        # int8 {0=edge, 1=non-edge} -> additive 0 / -1e30 bias, built once per
        # tile and reused across all heads.
        mask = adj_ref[...].astype(jnp.float32) * (-1e30)         # [TD, TS]
        h_src = h_ref[...]                                        # [TS, HCp] bf16
        a_dst = a_dst_ref[...]                                    # [TD, H]   f32
        a_srcT = a_srcT_ref[...]                                  # [H, TS]   f32

        for h in range(heads):                                    # static unroll
            e = a_dst[:, h:h + 1] + a_srcT[h:h + 1, :]            # [TD, TS]
            e = jnp.maximum(e, 0.2 * e)                           # leaky_relu(0.2)
            e = e + mask                                          # masked logits
            m_old = m_ref[:, h:h + 1]
            m_new = jnp.maximum(m_old, jnp.max(e, axis=-1, keepdims=True))
            corr = jnp.exp(m_old - m_new)
            p = jnp.exp(e - m_new)                                # masked lanes -> 0
            l_ref[:, h:h + 1] = (corr * l_ref[:, h:h + 1]
                                 + jnp.sum(p, axis=-1, keepdims=True))
            cols = slice(h * channels, (h + 1) * channels)
            acc_ref[:, cols] = corr * acc_ref[:, cols] + jnp.dot(
                p.astype(jnp.bfloat16), h_src[:, cols],
                preferred_element_type=jnp.float32)               # unnormalized
            m_ref[:, h:h + 1] = m_new

    @pl.when(s == pl.num_programs(1) - 1)
    def _():
        l = l_ref[...]                                            # [TD, H]
        # isolated dst nodes: denom forced to 1 -> output 0 (+bias)
        inv = pl.reciprocal(jnp.where(l > 0, l, 1.0), approx=True)
        # spread each head's 1/denom across that head's channel block via MXU
        inv_full = jnp.dot(inv, expand_ref[...], preferred_element_type=jnp.float32)
        out_ref[...] = (acc_ref[...] * inv_full + bias_ref[...]).astype(out_ref.dtype)


def gat_conv_pallas(x, edge_index, n_src, n_dst, w, att_src, att_dst, bias,
                    heads, channels, tile_d=512, tile_s=1024):
    """One PyG-style GATConv layer (add_self_loops=False, concat=True, dropout=0)."""
    hc = heads * channels
    hc_pad = _round_up(hc, 128)                       # lane-dense h / acc / out slab

    # ---- tile selection: int8 sublane packing (32) + >=2 dst tiles when possible
    nd_packed = _round_up(n_dst, _ADJ_PACK)
    if nd_packed > _ADJ_PACK:
        tile_d = min(tile_d, _round_up((n_dst + 1) // 2, _ADJ_PACK), nd_packed)
    else:
        tile_d = _ADJ_PACK
    tile_s = min(tile_s, _round_up(n_src, 128))
    nd_pad = _round_up(n_dst, tile_d)
    ns_pad = _round_up(n_src, tile_s)

    # ---- stage 1: single fused projection matmul over src rows ----
    att_src_blk = _block_diag_att(att_src, heads, channels)          # [H*C, H]
    att_dst_blk = _block_diag_att(att_dst, heads, channels)
    w_f32 = w.astype(jnp.float32)
    w_pad = jnp.pad(w_f32, ((0, 0), (0, hc_pad - hc)))
    w_logit = jnp.concatenate([w_f32 @ att_src_blk, w_f32 @ att_dst_blk], axis=1)
    wext_cols = _round_up(hc_pad + 2 * heads, 128)
    w_ext = jnp.concatenate(
        [w_pad, jnp.pad(w_logit, ((0, 0), (0, wext_cols - hc_pad - 2 * heads)))],
        axis=1)                                                      # [fin, wext_cols]
    h, a_all = _gat_project(x, w_ext, hc_pad, heads, tile_s)
    # Layout plumbing only (tiny arrays): src logits in lane orientation, dst
    # logits restricted to the first n_dst rows (dst nodes are a prefix of src).
    a_srcT = a_all[:, :heads].T                                      # [H, ns_pad]
    a_dst = jnp.pad(a_all[:n_dst, heads:2 * heads], ((0, nd_pad - n_dst), (0, 0)))

    # ---- int8 adjacency (0 = edge, 1 = non-edge) ----
    # TODO(synk): replace with a CSR scalar-prefetch neighbor-gather variant for
    # production KPGNN batch sizes (dense mask is O(Nd*Ns)).
    adj = jnp.ones((nd_pad, ns_pad), jnp.int8)
    adj = adj.at[edge_index[1], edge_index[0]].set(0)

    # per-(dst-tile, src-tile) edge counts for block-sparse skipping (SMEM prefetch)
    nd_tiles, ns_tiles = nd_pad // tile_d, ns_pad // tile_s
    counts = jnp.zeros((nd_tiles, ns_tiles), jnp.int32)
    counts = counts.at[edge_index[1] // tile_d, edge_index[0] // tile_s].add(1)

    bias_p = jnp.pad(bias.reshape(1, hc).astype(jnp.float32),
                     ((0, 0), (0, hc_pad - hc)))
    expand = jnp.zeros((heads, hc_pad), jnp.float32)    # expand[h, hC:(h+1)C] = 1
    for hd in range(heads):
        expand = expand.at[hd, hd * channels:(hd + 1) * channels].set(1.0)

    kernel = functools.partial(_gat_attn_kernel, heads, channels)
    out = pl.pallas_call(
        kernel,
        out_shape=jax.ShapeDtypeStruct((nd_pad, hc_pad), jnp.float32),
        grid_spec=pltpu.PrefetchScalarGridSpec(
            num_scalar_prefetch=1,                       # counts -> SMEM
            grid=(nd_tiles, ns_tiles),
            in_specs=[pl.BlockSpec((tile_d, heads), lambda d, s, c: (d, 0)),   # a_dst
                      pl.BlockSpec((heads, tile_s), lambda d, s, c: (0, s)),   # a_srcT
                      pl.BlockSpec((tile_s, hc_pad), lambda d, s, c: (s, 0)),  # h (bf16)
                      pl.BlockSpec((tile_d, tile_s), lambda d, s, c: (d, s)),  # adj i8
                      pl.BlockSpec((1, hc_pad), lambda d, s, c: (0, 0)),       # bias
                      pl.BlockSpec((heads, hc_pad), lambda d, s, c: (0, 0))],  # expand
            out_specs=pl.BlockSpec((tile_d, hc_pad), lambda d, s, c: (d, 0)),
            scratch_shapes=[pltpu.VMEM((tile_d, heads), jnp.float32),   # running max
                            pltpu.VMEM((tile_d, heads), jnp.float32),   # running denom
                            pltpu.VMEM((tile_d, hc_pad), jnp.float32)]),  # f32 accum
        compiler_params=pltpu.CompilerParams(
            dimension_semantics=("parallel", "arbitrary"),
            vmem_limit_bytes=_VMEM_LIMIT),
    )(counts, a_dst, a_srcT, h, adj, bias_p, expand)
    return out[:n_dst, :hc]


# ----------------------------- glue / reference -----------------------------

def make_edges(n_src, n_dst, deg):
    """Deterministic local edge_index ([2, E], row0=src, row1=dst), unique edges."""
    src, dst = [], []
    for i in range(n_dst):
        for k in range(deg):
            dst.append(i)
            src.append((i * 3 + k) % n_src)
    return jnp.array([src, dst], dtype=jnp.int32)


def gat_conv_ref(x_src, x_dst, edge_index, w, att_src, att_dst, bias, heads, channels):
    """Pure-JAX per-edge reference (PyG GATConv semantics)."""
    src, dst = edge_index[0], edge_index[1]
    n_dst = x_dst.shape[0]
    h_src = (x_src @ w).reshape(-1, heads, channels)
    h_dst = (x_dst @ w).reshape(-1, heads, channels)
    a_src = (h_src * att_src[None]).sum(-1)                 # [Ns, H]
    a_dst = (h_dst * att_dst[None]).sum(-1)                 # [Nd, H]
    e = jax.nn.leaky_relu(a_src[src] + a_dst[dst], 0.2)     # [E, H]
    e_max = jax.ops.segment_max(e, dst, num_segments=n_dst)
    p = jnp.exp(e - e_max[dst])
    denom = jax.ops.segment_sum(p, dst, num_segments=n_dst)
    alpha = p / denom[dst]
    msg = h_src[src] * alpha[..., None]                     # [E, H, C]
    out = jax.ops.segment_sum(msg, dst, num_segments=n_dst) # [Nd, H, C]
    return out.reshape(n_dst, heads * channels) + bias[0]


def glorot(key, shape):
    fan_in, fan_out = shape[-2], shape[-1]
    lim = (6.0 / (fan_in + fan_out)) ** 0.5
    return jax.random.uniform(key, shape, jnp.float32, -lim, lim)


if __name__ == "__main__":
    in_dim, hid_dim, out_dim, heads = 16, 8, 8, 4
    n0, n1, n2 = 16, 8, 4   # nodes seen by layer1-src, layer1-dst/layer2-src, layer2-dst

    key = jax.random.PRNGKey(0)
    kx, k1, k2, k3, k4, k5, k6, k7, k8 = jax.random.split(key, 9)

    x = jax.random.normal(kx, (n0, in_dim), jnp.float32)

    # GAT1 = GATConv(in_dim, hid_dim, heads=heads)
    w1 = glorot(k1, (in_dim, heads * hid_dim))
    att_src1 = glorot(k2, (heads, hid_dim))
    att_dst1 = glorot(k3, (heads, hid_dim))
    b1 = 0.1 * jax.random.normal(k4, (1, heads * hid_dim), jnp.float32)

    # GAT2 = GATConv(heads * hid_dim, out_dim)  (heads=1)
    w2 = glorot(k5, (heads * hid_dim, out_dim))
    att_src2 = glorot(k6, (1, out_dim))
    att_dst2 = glorot(k7, (1, out_dim))
    b2 = 0.1 * jax.random.normal(k8, (1, out_dim), jnp.float32)

    # NeighborSampler-style adjs: (edge_index, e_id, size=(n_src, n_dst))
    adjs = [
        (make_edges(n0, n1, deg=4), None, (n0, n1)),
        (make_edges(n1, n2, deg=3), None, (n1, n2)),
    ]
    layer_params = [
        (w1, att_src1, att_dst1, b1, heads, hid_dim),
        (w2, att_src2, att_dst2, b2, 1, out_dim),
    ]

    # Forward pass, mirroring GAT.forward(x, adjs, device)
    h = x
    h_ref = x
    for (edge_index, _, size), (w, a_s, a_d, b, H, C) in zip(adjs, layer_params):
        h = gat_conv_pallas(h, edge_index, size[0], size[1], w, a_s, a_d, b, H, C)

        h_ref_target = h_ref[:size[1]]
        h_ref = gat_conv_ref(h_ref, h_ref_target, edge_index, w, a_s, a_d, b, H, C)

    h = jax.block_until_ready(h)
    assert h.shape == (n2, out_dim), h.shape
    # Tolerance covers bf16 h / bf16 softmax-weight MXU operands, the approx
    # reciprocal normalization, and online-softmax reassociation across 2 layers.
    assert jnp.allclose(h, h_ref, atol=2e-2, rtol=2e-2), (h, h_ref)
    print("KERNEL_OK")
</pallas_src>

<mosaic_0001>
module attributes {stable_mosaic.version = 11 : i64} {
  func.func @_gat_proj_kernel(%arg0: i32, %arg1: memref<128x16xf32, #tpu.memory_space<vmem>>, %arg2: memref<16x256xf32, #tpu.memory_space<vmem>>, %arg3: memref<128x128xbf16, #tpu.memory_space<vmem>>, %arg4: memref<128x8xf32, #tpu.memory_space<vmem>>) attributes {dimension_semantics = [#tpu.dimension_semantics<parallel>], iteration_bounds = array<i64: 1>, scalar_prefetch = 0 : i64, scratch_operands = 0 : i64, tpu.core_type = #tpu.core_type<tc>, window_params = [{transform_indices = @transform_0, window_bounds = array<i64: 128, 16>}, {pipeline_mode = #tpu.pipeline_mode<synchronous>, transform_indices = @transform_1, window_bounds = array<i64: 16, 256>}, {transform_indices = @transform_2, window_bounds = array<i64: 128, 128>}, {transform_indices = @transform_3, window_bounds = array<i64: 128, 8>}]} {
    %c0 = arith.constant 0 : index
    %c0_0 = arith.constant 0 : index
    %0 = vector.load %arg1[%c0, %c0_0] : memref<128x16xf32, #tpu.memory_space<vmem>>, vector<128x16xf32>
    %c0_1 = arith.constant 0 : index
    %c0_2 = arith.constant 0 : index
    %1 = vector.load %arg2[%c0_1, %c0_2] : memref<16x256xf32, #tpu.memory_space<vmem>>, vector<16x256xf32>
    %cst = arith.constant dense<0.000000e+00> : vector<128x256xf32>
    %2 = tpu.matmul %0, %1, %cst {dimension_numbers = #tpu.dot_dimension_numbers<[1], [0], [0], [1], [0, 0, 1, 1], [], []>} : vector<128x16xf32>, vector<16x256xf32>, vector<128x256xf32> -> vector<128x256xf32>
    %3 = vector.extract_strided_slice %2 {offsets = [0, 0], sizes = [128, 128], strides = [1, 1]} : vector<128x256xf32> to vector<128x128xf32>
    %4 = arith.truncf %3 : vector<128x128xf32> to vector<128x128xbf16>
    %c0_3 = arith.constant 0 : index
    %c0_4 = arith.constant 0 : index
    %5 = vector.load %arg3[%c0_3, %c0_4] : memref<128x128xbf16, #tpu.memory_space<vmem>>, vector<128x128xbf16>
    tpu.vector_store %arg3[%c0_3, %c0_4], %4 {strides = array<i32>} : memref<128x128xbf16, #tpu.memory_space<vmem>>, vector<128x128xbf16>,
    %6 = vector.extract_strided_slice %2 {offsets = [0, 128], sizes = [128, 8], strides = [1, 1]} : vector<128x256xf32> to vector<128x8xf32>
    %c0_5 = arith.constant 0 : index
    %c0_6 = arith.constant 0 : index
    %7 = vector.load %arg4[%c0_5, %c0_6] : memref<128x8xf32, #tpu.memory_space<vmem>>, vector<128x8xf32>
    tpu.vector_store %arg4[%c0_5, %c0_6], %6 {strides = array<i32>} : memref<128x8xf32, #tpu.memory_space<vmem>>, vector<128x8xf32>,
    return
  }
  func.func @transform_0(%arg0: i32) -> (i32, i32) {
    %c0_i32 = arith.constant 0 : i32
    %c0_i32_0 = arith.constant 0 : i32
    return %arg0, %c0_i32 : i32, i32
  }
  func.func @transform_1(%arg0: i32) -> (i32, i32) {
    %c0_i32 = arith.constant 0 : i32
    %c0_i32_0 = arith.constant 0 : i32
    %c0_i32_1 = arith.constant 0 : i32
    return %c0_i32, %c0_i32_0 : i32, i32
  }
  func.func @transform_2(%arg0: i32) -> (i32, i32) {
    %c0_i32 = arith.constant 0 : i32
    %c0_i32_0 = arith.constant 0 : i32
    return %arg0, %c0_i32 : i32, i32
  }
  func.func @transform_3(%arg0: i32) -> (i32, i32) {
    %c0_i32 = arith.constant 0 : i32
    %c0_i32_0 = arith.constant 0 : i32
    return %arg0, %c0_i32 : i32, i32
  }
}

</mosaic_0001>

<bundles_post_ra>
// kernel: tpu_custom_call.1
= control target key start
LH: loop header
LB: loop body
LE: loop exit
PB: predicated region body
PF: predicated region fallthrough
CT: control target
= control target key end

     0   :  { %vm34_vm0 = vcmask 130048   ;;  %s578_s0 = inlined_call_operand.vmem [shape: f32[128,16], index: 0, kind: input, shape index: {}]   ;;  %s579_s1 = inlined_call_operand.vmem [shape: f32[16,256], index: 1, kind: input, shape index: {}]   ;;  %s580_s2 = inlined_call_operand.hbm [shape: bf16[128,128], index: 2, kind: output, shape index: {0}]   ;;  %s581_s3 = inlined_call_operand.vmem [shape: f32[128,8], index: 3, kind: output, shape index: {1}]  }
   0x1   :  { %v32_v0 = vld [vmem:[%s579_s1 + $0x10] sm:$0xff]  ;;  %v30_v1 = vld [vmem:[%s579_s1] sm:$0xff]  ;;  %v33_v4 = vld [vmem:[%s579_s1 + $0x18] sm:$0xff] }
   0x2   :  { %97 = vmatpush.msra.mxu0 %v32_v0  ;;  %363 = vmatpush.msra.mxu2 %v32_v0  ;;  %v14_v2 = vld [vmem:[%s578_s0] sm:$0xff]  ;;  %v31_v5 = vld [vmem:[%s579_s1 + $0x8] sm:$0xff] }
   0x3   :  { %v22_v3 = vld [vmem:[%s578_s0 + $0x40] sm:$0xff]  ;;  %365 = vmatpush.msra.mxu3 %v33_v4  ;;  %162 = vmatpush.msra.mxu1 %v33_v4 }
   0x4   :  { %98 = vmatpush.msra.mxu0 %v30_v1  ;;  %364 = vmatpush.msra.mxu2 %v30_v1 }
   0x5   :  { %284 = vmatmul.msk.f32.vlgmr.msra.gmra.mxu0 %vm34_vm0, %v14_v2  ;;  %292 = vmatmul.msk.f32.vlgmr.msra.gmra.mxu2 %vm34_vm0, %v22_v3 }
   0x6   :  { %9 = vsyncpa [#allocation3], 0  ;;  %366 = vmatpush.msra.mxu3 %v31_v5  ;;  %163 = vmatpush.msra.mxu1 %v31_v5  ;;  %v15_v6 = vld [vmem:[%s578_s0 + $0x8] sm:$0xff]  ;;  %v16_v8 = vld [vmem:[%s578_s0 + $0x10] sm:$0xff]  ;;  %vm245_vm1 = vcmask 64512   ;;  %s396_s25 = smov [#allocation2]  }
   0x7   :  { %308 = vmatmul.msk.f32.vlgmr.msra.gmra.mxu3 %vm34_vm0, %v22_v3  ;;  %300 = vmatmul.msk.f32.vlgmr.msra.gmra.mxu1 %vm34_vm0, %v14_v2  ;;  %v23_v7 = vld [vmem:[%s578_s0 + $0x48] sm:$0xff]  ;;  %v24_v9 = vld [vmem:[%s578_s0 + $0x50] sm:$0xff]  ;;  %v17_v10 = vld [vmem:[%s578_s0 + $0x18] sm:$0xff]  ;;  %s268_s27 = sshll.u32 %s580_s2, 4  ;;  %s397_s30 = smov 64   ;;  %s269_s27 = int_to_ptr.hbm [resolvable:$true] %s268_s27 }
   0x8   :  { %v25_v11 = vld [vmem:[%s578_s0 + $0x58] sm:$0xff]  ;;  %v18_v12 = vld [vmem:[%s578_s0 + $0x20] sm:$0xff]  ;;  %v19_v14 = vld [vmem:[%s578_s0 + $0x28] sm:$0xff]  ;;  %s398_s4 = smov 4  }
   0x9   :  { %v26_v13 = vld [vmem:[%s578_s0 + $0x60] sm:$0xff]  ;;  %v27_v15 = vld [vmem:[%s578_s0 + $0x68] sm:$0xff]  ;;  %v20_v16 = vld [vmem:[%s578_s0 + $0x30] sm:$0xff] }
   0xa   :  { %v28_v17 = vld [vmem:[%s578_s0 + $0x70] sm:$0xff]  ;;  %v21_v18 = vld [vmem:[%s578_s0 + $0x38] sm:$0xff] }
   0xb   :  { %v29_v19 = vld [vmem:[%s578_s0 + $0x78] sm:$0xff]  ;;  %s266_s0 = sshll.u32 %s396_s25, 4  ;;  %s267_s0 = int_to_ptr.vmem [resolvable:$true] %s266_s0 }
   0xd   :  { %285 = vmatmul.msk.f32.gmra.mxu0 %vm34_vm0, %v15_v6  ;;  %293 = vmatmul.msk.f32.gmra.mxu2 %vm34_vm0, %v23_v7 }
   0xf   :  { %309 = vmatmul.msk.f32.gmra.mxu3 %vm34_vm0, %v23_v7  ;;  %301 = vmatmul.msk.f32.gmra.mxu1 %vm34_vm0, %v15_v6 }
  0x15   :  { %286 = vmatmul.msk.f32.gmra.mxu0 %vm34_vm0, %v16_v8  ;;  %294 = vmatmul.msk.f32.gmra.mxu2 %vm34_vm0, %v24_v9 }
  0x17   :  { %310 = vmatmul.msk.f32.gmra.mxu3 %vm34_vm0, %v24_v9  ;;  %302 = vmatmul.msk.f32.gmra.mxu1 %vm34_vm0, %v16_v8 }
  0x1d   :  { %287 = vmatmul.msk.f32.gmra.mxu0 %vm34_vm0, %v17_v10  ;;  %295 = vmatmul.msk.f32.gmra.mxu2 %vm34_vm0, %v25_v11 }
  0x1f   :  { %311 = vmatmul.msk.f32.gmra.mxu3 %vm34_vm0, %v25_v11  ;;  %303 = vmatmul.msk.f32.gmra.mxu1 %vm34_vm0, %v17_v10 }
  0x25   :  { %288 = vmatmul.msk.f32.gmra.mxu0 %vm34_vm0, %v18_v12  ;;  %296 = vmatmul.msk.f32.gmra.mxu2 %vm34_vm0, %v26_v13 }
  0x27   :  { %312 = vmatmul.msk.f32.gmra.mxu3 %vm34_vm0, %v26_v13  ;;  %304 = vmatmul.msk.f32.gmra.mxu1 %vm34_vm0, %v18_v12 }
  0x2d   :  { %289 = vmatmul.msk.f32.gmra.mxu0 %vm34_vm0, %v19_v14  ;;  %297 = vmatmul.msk.f32.gmra.mxu2 %vm34_vm0, %v27_v15 }
  0x2f   :  { %313 = vmatmul.msk.f32.gmra.mxu3 %vm34_vm0, %v27_v15  ;;  %305 = vmatmul.msk.f32.gmra.mxu1 %vm34_vm0, %v19_v14 }
  0x35   :  { %290 = vmatmul.msk.f32.gmra.mxu0 %vm34_vm0, %v20_v16  ;;  %298 = vmatmul.msk.f32.gmra.mxu2 %vm34_vm0, %v28_v17 }
  0x37   :  { %314 = vmatmul.msk.f32.gmra.mxu3 %vm34_vm0, %v28_v17  ;;  %306 = vmatmul.msk.f32.gmra.mxu1 %vm34_vm0, %v20_v16 }
  0x3d   :  { %291 = vmatmul.msk.f32.gmra.mxu0 %vm34_vm0, %v21_v18  ;;  %299 = vmatmul.msk.f32.gmra.mxu2 %vm34_vm0, %v29_v19 }
  0x3f   :  { %315 = vmatmul.msk.f32.gmra.mxu3 %vm34_vm0, %v29_v19  ;;  %307 = vmatmul.msk.f32.gmra.mxu1 %vm34_vm0, %v21_v18 }
  0x82   :  { %v100_v20 = vpop.f32.mrf.mxu0 }
  0x84   :  { %v165_v21 = vpop.f32.mrf.mxu1 }
  0x85   :  { %246 = vst.msk [vmem:[%s581_s3] sm:$0xff] %vm245_vm1, %v165_v21 }
  0x88   :  { %v124_v22 = vpop.f32.mrf.mxu2 }
  0x8a   :  { %v103_v23 = vpop.f32.mrf.mxu0  ;;  %v189_v24 = vpop.f32.mrf.mxu3 }
  0x8b   :  { %v319_v25 = vpack.c.bf16 %v103_v23, %v100_v20  ;;  %254 = vst.msk [vmem:[%s581_s3 + $0x40] sm:$0xff] %vm245_vm1, %v189_v24 }
  0x8c   :  { %v168_v26 = vpop.f32.mrf.mxu1 }
  0x8d   :  { %320 = vst [vmem:[#allocation2] sm:$0xff] %v319_v25  }
  0x8e   :  { %247 = vst.msk [vmem:[%s581_s3 + $0x8] sm:$0xff] %vm245_vm1, %v168_v26 }
  0x90   :  { %v127_v27 = vpop.f32.mrf.mxu2 }
  0x91   :  { %v339_v28 = vpack.c.bf16 %v127_v27, %v124_v22 }
  0x92   :  { %v106_v29 = vpop.f32.mrf.mxu0  ;;  %v192_v30 = vpop.f32.mrf.mxu3 }
  0x93   :  { %359 = vst [vmem:[#allocation2 + $0x20] sm:$0xff] %v339_v28  }
  0x94   :  { %255 = vst.msk [vmem:[%s581_s3 + $0x48] sm:$0xff] %vm245_vm1, %v192_v30  ;;  %v171_v31 = vpop.f32.mrf.mxu1 }
  0x95   :  { %248 = vst.msk [vmem:[%s581_s3 + $0x10] sm:$0xff] %vm245_vm1, %v171_v31 }
  0x98   :  { %v130_v32 = vpop.f32.mrf.mxu2 }
  0x9a   :  { %v109_v33 = vpop.f32.mrf.mxu0  ;;  %v195_v34 = vpop.f32.mrf.mxu3 }
  0x9b   :  { %v324_v35 = vpack.c.bf16 %v109_v33, %v106_v29  ;;  %256 = vst.msk [vmem:[%s581_s3 + $0x50] sm:$0xff] %vm245_vm1, %v195_v34 }
  0x9c   :  { %v174_v36 = vpop.f32.mrf.mxu1 }
  0x9d   :  { %356 = vst [vmem:[#allocation2 + $0x8] sm:$0xff] %v324_v35  }
  0x9e   :  { %249 = vst.msk [vmem:[%s581_s3 + $0x18] sm:$0xff] %vm245_vm1, %v174_v36 }
  0xa0   :  { %v133_v37 = vpop.f32.mrf.mxu2 }
  0xa1   :  { %v344_v38 = vpack.c.bf16 %v133_v37, %v130_v32 }
  0xa2   :  { %v112_v39 = vpop.f32.mrf.mxu0  ;;  %v198_v40 = vpop.f32.mrf.mxu3 }
  0xa3   :  { %360 = vst [vmem:[#allocation2 + $0x28] sm:$0xff] %v344_v38  }
  0xa4   :  { %257 = vst.msk [vmem:[%s581_s3 + $0x58] sm:$0xff] %vm245_vm1, %v198_v40  ;;  %v177_v41 = vpop.f32.mrf.mxu1 }
  0xa5   :  { %250 = vst.msk [vmem:[%s581_s3 + $0x20] sm:$0xff] %vm245_vm1, %v177_v41 }
  0xa8   :  { %v136_v42 = vpop.f32.mrf.mxu2 }
  0xaa   :  { %v115_v43 = vpop.f32.mrf.mxu0  ;;  %v201_v44 = vpop.f32.mrf.mxu3 }
  0xab   :  { %v329_v45 = vpack.c.bf16 %v115_v43, %v112_v39  ;;  %258 = vst.msk [vmem:[%s581_s3 + $0x60] sm:$0xff] %vm245_vm1, %v201_v44 }
  0xac   :  { %v180_v46 = vpop.f32.mrf.mxu1 }
  0xad   :  { %357 = vst [vmem:[#allocation2 + $0x10] sm:$0xff] %v329_v45  }
  0xae   :  { %251 = vst.msk [vmem:[%s581_s3 + $0x28] sm:$0xff] %vm245_vm1, %v180_v46 }
  0xb0   :  { %v139_v47 = vpop.f32.mrf.mxu2 }
  0xb1   :  { %v349_v48 = vpack.c.bf16 %v139_v47, %v136_v42 }
  0xb2   :  { %v118_v49 = vpop.f32.mrf.mxu0  ;;  %v204_v50 = vpop.f32.mrf.mxu3 }
  0xb3   :  { %361 = vst [vmem:[#allocation2 + $0x30] sm:$0xff] %v349_v48  }
  0xb4   :  { %259 = vst.msk [vmem:[%s581_s3 + $0x68] sm:$0xff] %vm245_vm1, %v204_v50  ;;  %v183_v51 = vpop.f32.mrf.mxu1 }
  0xb5   :  { %252 = vst.msk [vmem:[%s581_s3 + $0x30] sm:$0xff] %vm245_vm1, %v183_v51 }
  0xb8   :  { %v142_v52 = vpop.f32.mrf.mxu2 }
  0xba   :  { %v121_v53 = vpop.f32.mrf.mxu0  ;;  %v207_v54 = vpop.f32.mrf.mxu3 }
  0xbb   :  { %v334_v55 = vpack.c.bf16 %v121_v53, %v118_v49  ;;  %260 = vst.msk [vmem:[%s581_s3 + $0x70] sm:$0xff] %vm245_vm1, %v207_v54 }
  0xbc   :  { %v186_v56 = vpop.f32.mrf.mxu1 }
  0xbd   :  { %358 = vst [vmem:[#allocation2 + $0x18] sm:$0xff] %v334_v55  }
  0xbe   :  { %253 = vst.msk [vmem:[%s581_s3 + $0x38] sm:$0xff] %vm245_vm1, %v186_v56 }
  0xc0   :  { %v145_v57 = vpop.f32.mrf.mxu2 }
  0xc1   :  { %v354_v58 = vpack.c.bf16 %v145_v57, %v142_v52 }
  0xc2   :  { %v210_v59 = vpop.f32.mrf.mxu3 }
  0xc3   :  { %362 = vst [vmem:[#allocation2 + $0x38] sm:$0xff] %v354_v58  }
  0xc4   :  { %261 = vst.msk [vmem:[%s581_s3 + $0x78] sm:$0xff] %vm245_vm1, %v210_v59 }
  0xc5   :  { %274 = dma.vmem_to_hbm [thread:$0]  %s267_s0, 1024, %s269_s27, [#allocation3], %s397_s30, %s397_s30, %s398_s4  }
  0xc6   :  { %394 = dma.done.wait [#allocation3], 1024  }
  0xc7   :  { %395 = vsyncadd [#allocation3], 4294966272 }
  0xc8   :  { %283 = vsyncpa [#allocation3], 1 }

</bundles_post_ra>
